<compile_context>
chip_gen: v7x
topology: tpu7x:2x2x1
jax: 0.10.0
libtpu: 0.0.40
codegen_flags: <defaults>
</compile_context>

<pallas_src>
import math
import functools

import jax
import jax.numpy as jnp
from jax.experimental import pallas as pl
from jax.experimental.pallas import tpu as pltpu


# ------------------------- tiled batched linear ---------------------------

def _proj_kernel(x_ref, w_ref, o_ref, acc_ref):
    # x_ref: (1, tm, tk) f32, w_ref: (1, tn, tk) f32 (PyTorch (out, in) layout),
    # o_ref: (1, tm, tn) f32, acc_ref: (tm, tn) f32 VMEM scratch.
    @pl.when(pl.program_id(3) == 0)
    def _():
        acc_ref[...] = jnp.zeros_like(acc_ref)

    acc_ref[...] += jax.lax.dot_general(
        x_ref[0].astype(jnp.bfloat16),
        w_ref[0].astype(jnp.bfloat16),
        dimension_numbers=(((1,), (1,)), ((), ())),   # y = x @ W.T, no transpose
        preferred_element_type=jnp.float32,
    )

    @pl.when(pl.program_id(3) == pl.num_programs(3) - 1)
    def _():
        o_ref[0] = acc_ref[...].astype(o_ref.dtype)


def _pick_tile(dim, target, align):
    """Largest tile <= target that divides `dim` and is a multiple of `align`;
    falls back to the full dimension (always a legal block size)."""
    if dim <= target:
        return dim
    t = (target // align) * align
    while t >= align:
        if dim % t == 0:
            return t
        t -= align
    return dim


def batched_linear(xs, ws, *, tm_target=256, tn_target=256, tk_target=512):
    """xs: (G, M, K) f32, ws: (G, N, K) f32 (PyTorch (out,in)) -> (G, M, N) f32."""
    G, M, K = xs.shape
    N = ws.shape[1]
    tm = _pick_tile(M, tm_target, 8)
    tn = _pick_tile(N, tn_target, 128)
    tk = _pick_tile(K, tk_target, 128)
    grid = (G, M // tm, N // tn, K // tk)
    return pl.pallas_call(
        _proj_kernel,
        out_shape=jax.ShapeDtypeStruct((G, M, N), jnp.float32),
        grid_spec=pltpu.PrefetchScalarGridSpec(
            num_scalar_prefetch=0,
            grid=grid,
            in_specs=[
                pl.BlockSpec((1, tm, tk), lambda g, i, j, k: (g, i, k)),
                pl.BlockSpec((1, tn, tk), lambda g, i, j, k: (g, j, k)),
            ],
            out_specs=pl.BlockSpec((1, tm, tn), lambda g, i, j, k: (g, i, j)),
            scratch_shapes=[pltpu.VMEM((tm, tn), jnp.float32)],
        ),
        compiler_params=pltpu.CompilerParams(
            dimension_semantics=("parallel", "parallel", "parallel", "arbitrary"),
        ),
    )(xs, ws)


# --------------------- fused multi-head attention core ---------------------

def _attention_kernel(vl_ref, q_ref, k_ref, v_ref, o_ref, *, num_heads, scale):
    # q_ref: (1, Sq, D); k_ref/v_ref: (1, Sk, D); o_ref: (1, Sq, D)
    b = pl.program_id(0)
    q_all = q_ref[0] * jnp.float32(scale)      # (Sq, D); 1/sqrt(Dh) folded into Q
    k_all = k_ref[0]                           # (Sk, D)
    v_all = v_ref[0]                           # (Sk, D)
    Sq, D = q_all.shape
    Sk = k_all.shape[0]
    Dh = D // num_heads

    vl = vl_ref[b]                             # per-batch valid length (SMEM)
    col = jax.lax.broadcasted_iota(jnp.int32, (Sq, Sk), 1)
    masked_to = jnp.float32(-1e6)              # d2l masked_softmax semantics

    # TODO(synk): for long sequences add flash-style KV tiling (online softmax
    # over an 'arbitrary' Sk grid axis); tile size must be re-derived per chip
    # generation (64 MiB VMEM on v7x vs 128 MiB on v5e/v6e).
    outs = []
    for h in range(num_heads):                 # static unroll: all heads per grid step
        lo = h * Dh
        qh = q_all[:, lo:lo + Dh].astype(jnp.bfloat16)
        kh = k_all[:, lo:lo + Dh].astype(jnp.bfloat16)
        vh = v_all[:, lo:lo + Dh].astype(jnp.bfloat16)
        # QK^T without materializing a transposed K (contract dim 1 of both).
        scores = jax.lax.dot_general(
            qh, kh, dimension_numbers=(((1,), (1,)), ((), ())),
            preferred_element_type=jnp.float32)          # (Sq, Sk) f32
        scores = jnp.where(col < vl, scores, masked_to)
        m = jnp.max(scores, axis=-1, keepdims=True)
        e = jnp.exp(scores - m)                           # f32 softmax math
        denom = jnp.sum(e, axis=-1, keepdims=True)
        attn = (e * pl.reciprocal(denom, approx=True)).astype(jnp.bfloat16)
        outs.append(jnp.dot(attn, vh, preferred_element_type=jnp.float32))

    # Single lane-dense (Sq, D = num_heads*Dh) store per grid step.
    o_ref[0] = jnp.concatenate(outs, axis=-1).astype(o_ref.dtype)


def fused_multi_head_dot_attention(q, k, v, valid_lens, num_heads):
    """q: (B, Sq, D), k/v: (B, Sk, D) f32, valid_lens: (B,) int32 -> (B, Sq, D)."""
    B, Sq, D = q.shape
    Sk = k.shape[1]
    scale = 1.0 / math.sqrt(D // num_heads)
    kernel = functools.partial(_attention_kernel, num_heads=num_heads, scale=scale)
    return pl.pallas_call(
        kernel,
        out_shape=jax.ShapeDtypeStruct((B, Sq, D), jnp.float32),
        grid_spec=pltpu.PrefetchScalarGridSpec(
            num_scalar_prefetch=1,
            grid=(B,),
            in_specs=[
                pl.BlockSpec((1, Sq, D), lambda b, vl: (b, 0, 0)),
                pl.BlockSpec((1, Sk, D), lambda b, vl: (b, 0, 0)),
                pl.BlockSpec((1, Sk, D), lambda b, vl: (b, 0, 0)),
            ],
            out_specs=pl.BlockSpec((1, Sq, D), lambda b, vl: (b, 0, 0)),
        ),
        compiler_params=pltpu.CompilerParams(
            dimension_semantics=("parallel",),   # independent per batch -> both v7x TCs
        ),
    )(valid_lens, q, k, v)


# --------------------------- module-level glue -----------------------------

def multi_head_attention(params, queries, keys, values, valid_lens, num_heads):
    """Forward pass of the PyTorch MultiHeadAttention module (bias=False, eval)."""
    B, Sq, _ = queries.shape
    Sk = keys.shape[1]
    num_hiddens = params["W_q"].shape[0]

    q2d = queries.reshape(B * Sq, queries.shape[2])
    k2d = keys.reshape(B * Sk, keys.shape[2])
    v2d = values.reshape(B * Sk, values.shape[2])

    if (q2d.shape == k2d.shape == v2d.shape
            and params["W_q"].shape == params["W_k"].shape == params["W_v"].shape):
        # Fused Q/K/V projection: one pallas_call over stacked (3, M, Din) inputs
        # and (3, D, Din) weights (one launch/pipeline prologue instead of three).
        xs = jnp.stack([q2d, k2d, v2d], axis=0)
        ws = jnp.stack([params["W_q"], params["W_k"], params["W_v"]], axis=0)
        qkv = batched_linear(xs, ws)                          # (3, M, num_hiddens)
        q = qkv[0].reshape(B, Sq, num_hiddens)
        k = qkv[1].reshape(B, Sk, num_hiddens)
        v = qkv[2].reshape(B, Sk, num_hiddens)
    else:
        q = batched_linear(q2d[None], params["W_q"][None])[0].reshape(B, Sq, num_hiddens)
        k = batched_linear(k2d[None], params["W_k"][None])[0].reshape(B, Sk, num_hiddens)
        v = batched_linear(v2d[None], params["W_v"][None])[0].reshape(B, Sk, num_hiddens)

    # TODO(synk): only 1-D (per-batch) valid_lens are supported; the d2l module
    # also accepts a (B, Sq) per-query variant.
    if valid_lens is not None:
        vl = valid_lens.astype(jnp.int32)
    else:
        vl = jnp.full((B,), Sk, dtype=jnp.int32)

    # All heads handled inside the kernel -> no transpose_qkv / transpose_output
    # HBM round-trips; output already is the (B, Sq, num_hiddens) concat.
    out_concat = fused_multi_head_dot_attention(q, k, v, vl, num_heads)

    y = batched_linear(out_concat.reshape(1, B * Sq, num_hiddens),
                       params["W_o"][None])[0]
    return y.reshape(B, Sq, num_hiddens)


# --------------------------------- main ------------------------------------

if __name__ == "__main__":
    # small deterministic config
    batch = 2
    num_queries = 8
    num_kv = 8
    num_hiddens = 32
    num_heads = 4
    key_size = query_size = value_size = num_hiddens

    root = jax.random.PRNGKey(0)
    k_q, k_k, k_v, k_o, k_x, k_y, k_z = jax.random.split(root, 7)

    def init_linear(key, out_f, in_f):
        # deterministic Kaiming-uniform-like init (nn.Linear weight shape (out, in))
        bound = 1.0 / math.sqrt(in_f)
        return jax.random.uniform(key, (out_f, in_f), jnp.float32, -bound, bound)

    params = {
        "W_q": init_linear(k_q, num_hiddens, query_size),
        "W_k": init_linear(k_k, num_hiddens, key_size),
        "W_v": init_linear(k_v, num_hiddens, value_size),
        "W_o": init_linear(k_o, num_hiddens, num_hiddens),
    }

    queries = jax.random.normal(k_x, (batch, num_queries, query_size), jnp.float32)
    keys = jax.random.normal(k_y, (batch, num_kv, key_size), jnp.float32)
    values = jax.random.normal(k_z, (batch, num_kv, value_size), jnp.float32)
    valid_lens = jnp.array([6, 8], dtype=jnp.int32)

    out = multi_head_attention(params, queries, keys, values, valid_lens, num_heads)
    out = jax.block_until_ready(out)
    assert out.shape == (batch, num_queries, num_hiddens)
    assert jnp.all(jnp.isfinite(out))

    # pure-JAX f32 reference (same semantics as the PyTorch module in eval mode).
    # Tolerance is relaxed because the kernel feeds the MXU bf16 operands and
    # uses the approx EUP reciprocal for the softmax denominator.
    def transpose_qkv(X, nh):
        B, S, D = X.shape
        X = X.reshape(B, S, nh, D // nh)
        X = jnp.transpose(X, (0, 2, 1, 3))
        return X.reshape(B * nh, S, D // nh)

    def transpose_output(X, nh):
        BH, S, Dh = X.shape
        X = X.reshape(BH // nh, nh, S, Dh)
        X = jnp.transpose(X, (0, 2, 1, 3))
        return X.reshape(X.shape[0], X.shape[1], nh * Dh)

    def ref_forward():
        def proj(x, w):
            return jnp.einsum("bsd,od->bso", x, w)
        q = transpose_qkv(proj(queries, params["W_q"]), num_heads)
        k = transpose_qkv(proj(keys, params["W_k"]), num_heads)
        v = transpose_qkv(proj(values, params["W_v"]), num_heads)
        vlr = jnp.repeat(valid_lens, num_heads, axis=0)
        scores = jnp.einsum("bqd,bkd->bqk", q, k) / math.sqrt(q.shape[-1])
        mask = jnp.arange(k.shape[1])[None, None, :] < vlr[:, None, None]
        scores = jnp.where(mask, scores, -1e6)
        attn = jax.nn.softmax(scores, axis=-1)
        o = jnp.einsum("bqk,bkd->bqd", attn, v)
        oc = transpose_output(o, num_heads)
        return jnp.einsum("bsd,od->bso", oc, params["W_o"])

    ref = ref_forward()
    assert jnp.allclose(out, ref, atol=5e-2, rtol=5e-2)

    print("KERNEL_OK")
</pallas_src>

<mosaic_0001>
module attributes {stable_mosaic.version = 11 : i64} {
  func.func @_proj_kernel(%arg0: i32, %arg1: i32, %arg2: i32, %arg3: i32, %arg4: memref<1x16x32xf32, #tpu.memory_space<vmem>>, %arg5: memref<1x32x32xf32, #tpu.memory_space<vmem>>, %arg6: memref<1x16x32xf32, #tpu.memory_space<vmem>>, %arg7: memref<16x32xf32, #tpu.memory_space<vmem>>) attributes {dimension_semantics = [#tpu.dimension_semantics<parallel>, #tpu.dimension_semantics<parallel>, #tpu.dimension_semantics<parallel>, #tpu.dimension_semantics<arbitrary>], iteration_bounds = array<i64: 3, 1, 1, 1>, scalar_prefetch = 0 : i64, scratch_operands = 1 : i64, tpu.core_type = #tpu.core_type<tc>, window_params = [{transform_indices = @transform_0, window_bounds = array<i64: 1, 16, 32>}, {transform_indices = @transform_1, window_bounds = array<i64: 1, 32, 32>}, {transform_indices = @transform_2, window_bounds = array<i64: 1, 16, 32>}]} {
    %c0_i32 = arith.constant 0 : i32
    %0 = arith.cmpi eq, %arg3, %c0_i32 : i32
    %1 = arith.extui %0 : i1 to i32
    %c0_i32_0 = arith.constant 0 : i32
    %2 = arith.cmpi ne, %1, %c0_i32_0 : i32
    scf.if %2 {
      %cst_12 = arith.constant 0.000000e+00 : f32
      %16 = vector.broadcast %cst_12 : f32 to vector<16x32xf32>
      %c0_13 = arith.constant 0 : index
      %c0_14 = arith.constant 0 : index
      %17 = vector.load %arg7[%c0_13, %c0_14] : memref<16x32xf32, #tpu.memory_space<vmem>>, vector<16x32xf32>
      tpu.vector_store %arg7[%c0_13, %c0_14], %16 {strides = array<i32>} : memref<16x32xf32, #tpu.memory_space<vmem>>, vector<16x32xf32>,
    } else {
    }
    %c0 = arith.constant 0 : index
    %c0_1 = arith.constant 0 : index
    %3 = vector.load %arg7[%c0, %c0_1] : memref<16x32xf32, #tpu.memory_space<vmem>>, vector<16x32xf32>
    %c0_2 = arith.constant 0 : index
    %c0_3 = arith.constant 0 : index
    %c0_4 = arith.constant 0 : index
    %4 = vector.load %arg4[%c0_2, %c0_3, %c0_4] : memref<1x16x32xf32, #tpu.memory_space<vmem>>, vector<1x16x32xf32>
    %5 = vector.shape_cast %4 : vector<1x16x32xf32> to vector<16x32xf32>
    %6 = arith.truncf %5 : vector<16x32xf32> to vector<16x32xbf16>
    %c0_5 = arith.constant 0 : index
    %c0_6 = arith.constant 0 : index
    %c0_7 = arith.constant 0 : index
    %7 = vector.load %arg5[%c0_5, %c0_6, %c0_7] : memref<1x32x32xf32, #tpu.memory_space<vmem>>, vector<1x32x32xf32>
    %8 = vector.shape_cast %7 : vector<1x32x32xf32> to vector<32x32xf32>
    %9 = arith.truncf %8 : vector<32x32xf32> to vector<32x32xbf16>
    %cst = arith.constant dense<0.000000e+00> : vector<16x32xf32>
    %10 = tpu.matmul %6, %9, %cst {dimension_numbers = #tpu.dot_dimension_numbers<[1], [1], [0], [0], [0, 0, 1, 0], [], []>} : vector<16x32xbf16>, vector<32x32xbf16>, vector<16x32xf32> -> vector<16x32xf32>
    %11 = arith.addf %3, %10 : vector<16x32xf32>
    %c0_8 = arith.constant 0 : index
    %c0_9 = arith.constant 0 : index
    %12 = vector.load %arg7[%c0_8, %c0_9] : memref<16x32xf32, #tpu.memory_space<vmem>>, vector<16x32xf32>
    tpu.vector_store %arg7[%c0_8, %c0_9], %11 {strides = array<i32>} : memref<16x32xf32, #tpu.memory_space<vmem>>, vector<16x32xf32>,
    %c0_i32_10 = arith.constant 0 : i32
    %13 = arith.cmpi eq, %arg3, %c0_i32_10 : i32
    %14 = arith.extui %13 : i1 to i32
    %c0_i32_11 = arith.constant 0 : i32
    %15 = arith.cmpi ne, %14, %c0_i32_11 : i32
    scf.if %15 {
      %c0_12 = arith.constant 0 : index
      %c0_13 = arith.constant 0 : index
      %16 = vector.load %arg7[%c0_12, %c0_13] : memref<16x32xf32, #tpu.memory_space<vmem>>, vector<16x32xf32>
      %c0_14 = arith.constant 0 : index
      %c0_15 = arith.constant 0 : index
      %c0_16 = arith.constant 0 : index
      %17 = vector.load %arg6[%c0_14, %c0_15, %c0_16] : memref<1x16x32xf32, #tpu.memory_space<vmem>>, vector<1x16x32xf32>
      %18 = vector.shape_cast %17 : vector<1x16x32xf32> to vector<16x32xf32>
      %19 = vector.shape_cast %16 : vector<16x32xf32> to vector<1x16x32xf32>
      tpu.vector_store %arg6[%c0_14, %c0_15, %c0_16], %19 {strides = array<i32>} : memref<1x16x32xf32, #tpu.memory_space<vmem>>, vector<1x16x32xf32>,
    } else {
    }
    return
  }
  func.func @transform_0(%arg0: i32, %arg1: i32, %arg2: i32, %arg3: i32) -> (i32, i32, i32) {
    %c0_i32 = arith.constant 0 : i32
    return %arg0, %arg1, %arg3 : i32, i32, i32
  }
  func.func @transform_1(%arg0: i32, %arg1: i32, %arg2: i32, %arg3: i32) -> (i32, i32, i32) {
    %c0_i32 = arith.constant 0 : i32
    return %arg0, %arg2, %arg3 : i32, i32, i32
  }
  func.func @transform_2(%arg0: i32, %arg1: i32, %arg2: i32, %arg3: i32) -> (i32, i32, i32) {
    %c0_i32 = arith.constant 0 : i32
    return %arg0, %arg1, %arg2 : i32, i32, i32
  }
}

</mosaic_0001>

<bundles_post_ra>
// kernel: tpu_custom_call.1
= control target key start
LH: loop header
LB: loop body
LE: loop exit
PB: predicated region body
PF: predicated region fallthrough
CT: control target
= control target key end

     0   :  { %7 = vsyncpa [#allocation4], 0  ;;  %s990_s0 = inlined_call_operand.hbm [shape: f32[3,16,32], index: 0, kind: input, shape index: {}]   ;;  %s991_s1 = inlined_call_operand.hbm [shape: f32[3,32,32], index: 1, kind: input, shape index: {}]   ;;  %s992_s2 = inlined_call_operand.hbm [shape: f32[3,16,32], index: 2, kind: output, shape index: {}]  }
   0x1   :  { %9 = vsyncpa [#allocation4 + $0x1], 0 }
   0x2   :  { %10 = vsyncpa [#allocation7], 0 }
   0x3   :  { %12 = vsyncpa [#allocation7 + $0x1], 0 }
   0x4   :  { %13 = vsyncpa [#allocation5], 0 }
   0x5   :  { %15 = vsyncpa [#allocation5 + $0x1], 0  ;;  %s748_s9 = smov 0   ;;  %s750_s10 = smov 0  }
   0x6   :  { %s752_s11 = smov 0   ;;  %s754_s12 = smov 0  }
   0x7   :  { %s756_s13 = smov 0   ;;  %s758_s14 = smov 0  }
   0x8 LB: > { %s469_s15 = sadd.s32 4294967295, %s722_s14   ;;  %s470_s16 = sadd.s32 4294967294, %s722_s14   ;;  %s722_s14 = sphi %s758_s14, %s21_s14   ;;  %s718_s13 = sphi %s756_s13, %s1009_s13   ;;  %s714_s12 = sphi %s754_s12, %s1008_s12   ;;  %s710_s11 = sphi %s752_s11, %s1007_s11   ;;  %s706_s10 = sphi %s750_s10, %s1006_s10   ;;  %s702_s9 = sphi %s748_s9, %s1005_s9  }
   0x9   : > { %s47_s17 = sadd.s32 1, %s718_s13  ;;  %s58_s18 = sadd.s32 1, %s710_s11 }
   0xa   : > { %p49_p0 = scmp.ge.s32.totalorder %s47_s17, 3  ;;  %p65_p1 = scmp.ne.s32.totalorder %s710_s11, %s706_s10 }
   0xb   : > { %p66_p2 = scmp.eq.s32.totalorder %s722_s14, 0  ;;  %p71_p3 = scmp.ne.s32.totalorder %s706_s10, %s702_s9 }
   0xc   : > { %s1011_s17 = smov (%p49_p0, %s47_s17), 0  ;;  %p72_p5 = scmp.eq.s32.totalorder %s469_s15, 0 }
   0xd   : > { %p789_p4 = por %p66_p2, %p65_p1  ;;  %s51_s20 = ssub.s32 %s718_s13, %s1011_s17 }
   0xe   : > { %p129_p6 = scmp.eq.s32.totalorder %s469_s15, 2  ;;  %p56_p7 = scmp.eq.s32.totalorder %s51_s20, 0 }
   0xf   : > { %p795_p8 = por %p72_p5, %p71_p3  ;;  %p135_p10 = scmp.eq.s32.totalorder %s470_s16, 2 }
  0x10   : > { %p799_p9 = por %p129_p6, %p65_p1  ;;  %p520_p12 = scmp.lt.s32.totalorder %s722_s14, 3 }
  0x11   : > { %s996_s21 = scalar_select %p795_p8, 1, 0 }
  0x12   : > { %s997_s22 = scalar_select %p799_p9, 1, 0 }
  0x13   : > { %s804_s23 = scalar_select %p56_p7, %s710_s11, %s58_s18  }
  0x14   : > { %p806_p11 = por %p135_p10, %p71_p3  ;;  %s812_s25 = sand.u32 1, %s710_s11  }
  0x15   : > { %s473_s26 = sshll.u32 %s812_s25, 4  ;;  %s489_s27 = sshll.u32 %s718_s13, 8 }
  0x16   : > { %s998_s24 = scalar_select %p806_p11, 1, 0 }
  0x17   : > { %s819_s30 = scalar_lea.hbm %s990_s0, %s489_s27  ;;  %s159_s3 = scalar_lea.vmem [#allocation3], %s473_s26 }
  0x18   : > { %s169_s4 = sshll.u32 %s159_s3, 4  ;;  %p825_p13 = pnand %p520_p12, %p789_p4  ;;  %s821_s4 = int_to_ptr.vmem [resolvable:$true] %s169_s4 }
  0x19   : > { %s156_s6 = scalar_lea.sflag [#allocation4], %s812_s25  ;;  %s576_s7 = scalar_lea.hbm %s819_s30, 256 }
  0x1a   : > { %p577_p1 = scmp.ne.s32.totalorder %s819_s30, %s576_s7  ;;  %p578_p2 = pneg %p825_p13 }
  0x1b   : > { %s581_s16 = scalar_lea.hbm %s990_s0, 768  ;;  %p582_p4 = scmp.lt.u32.totalorder %s819_s30, %s990_s0 }
  0x1c   : > { %p579_p3 = pnand %p578_p2, %p577_p1  ;;  %p583_p6 = scmp.lt.u32.totalorder %s581_s16, %s576_s7 }
  0x1d   : > { %p585_p10 = scmp.lt.u32.totalorder %s576_s7, %s819_s30 }
  0x1e   : > { %p580_p5 = pneg %p579_p3  ;;  %p584_p7 = por %p583_p6, %p582_p4 }
  0x20   : > { %p586_p12 = por %p585_p10, %p584_p7 }
  0x22   : > { %p587_p0 = pnand %p586_p12, %p580_p5 }
  0x24   : > { %590 = shalt.err (!%p587_p0)
}
  0x25   : > { %s591_s20 = scalar_lea.vmem %s821_s4, 256  ;;  %s724_s26 = smov [#allocation3]  }
  0x26   : > { %p592_p1 = scmp.ne.s32.totalorder %s821_s4, %s591_s20  ;;  %s596_s27 = sshll.u32 %s724_s26, 4  ;;  %s597_s27 = int_to_ptr.vmem [resolvable:$false] %s596_s27 }
  0x27   : > { %s598_s28 = scalar_lea.vmem %s597_s27, 512  ;;  %p599_p9 = scmp.lt.s32.totalorder %s821_s4, %s597_s27 }
  0x28   : > { %p594_p3 = pnand %p592_p1, %p578_p2  ;;  %p600_p4 = scmp.lt.s32.totalorder %s598_s28, %s591_s20 }
  0x2a   : > { %p595_p11 = pneg %p594_p3  ;;  %p601_p6 = por %p600_p4, %p599_p9 }
  0x2c   : > { %p602_p7 = pnand %p601_p6, %p595_p11 }
  0x2e   : > { %605 = shalt.err (!%p602_p7)
}
  0x2f   : > { %s725_s29 = smov 128   ;;  %s726_s3 = smov 8  }
  0x30   : > { %512 = dma.hbm_to_vmem [thread:$0]  (!%p825_p13), %s819_s30, 256, %s821_s4, %s156_s6, %s725_s29, %s725_s29, %s726_s3  }
  0x31   : > { %p201_p9 = scmp.lt.s32.totalorder %s722_s14, 4  ;;  %s476_s7 = sshll.u32 %s812_s25, 5 }
  0x32   : > { %s490_s8 = sshll.u32 %s718_s13, 9  ;;  %p1000_p11 = scmp.ge.s32.totalorder %s722_s14, 1 }
  0x33   : > { %s873_s19 = scalar_lea.hbm %s991_s1, %s490_s8  ;;  %s183_s20 = scalar_lea.vmem [#allocation6], %s476_s7 }
  0x34   : > { %p866_p0 = pnand %p1000_p11, %p201_p9  ;;  %s193_s26 = sshll.u32 %s183_s20, 4  ;;  %s875_s26 = int_to_ptr.vmem [resolvable:$true] %s193_s26 }
  0x35   : > { %s180_s30 = scalar_lea.sflag [#allocation7], %s812_s25  ;;  %s606_s4 = scalar_lea.hbm %s873_s19, 512 }
  0x36   : > { %p607_p5 = scmp.ne.s32.totalorder %s873_s19, %s606_s4  ;;  %s611_s28 = scalar_lea.hbm %s991_s1, 1536 }
  0x37   : > { %p612_p1 = scmp.lt.u32.totalorder %s873_s19, %s991_s1  ;;  %p613_p3 = scmp.lt.u32.totalorder %s611_s28, %s606_s4 }
  0x38   : > { %p609_p10 = pnand %p607_p5, %p578_p2  ;;  %p615_p6 = scmp.lt.u32.totalorder %s606_s4, %s873_s19 }
  0x39   : > { %p614_p4 = por %p613_p3, %p612_p1 }
  0x3a   : > { %p610_p12 = pneg %p609_p10 }
  0x3b   : > { %p616_p7 = por %p615_p6, %p614_p4 }
  0x3d   : > { %p617_p9 = pnand %p616_p7, %p610_p12 }
  0x3f   : > { %620 = shalt.err (!%p617_p9)
}
  0x40   : > { %s621_s7 = scalar_lea.vmem %s875_s26, 512  ;;  %s727_s18 = smov [#allocation6]  }
  0x41   : > { %p622_p11 = scmp.ne.s32.totalorder %s875_s26, %s621_s7  ;;  %s626_s20 = sshll.u32 %s727_s18, 4  ;;  %s627_s20 = int_to_ptr.vmem [resolvable:$false] %s626_s20 }
  0x42   : > { %s628_s6 = scalar_lea.vmem %s627_s20, 1024  ;;  %p629_p8 = scmp.lt.s32.totalorder %s875_s26, %s627_s20 }
  0x43   : > { %p624_p5 = pnand %p622_p11, %p578_p2  ;;  %p630_p1 = scmp.lt.s32.totalorder %s628_s6, %s621_s7 }
  0x45   : > { %p625_p10 = pneg %p624_p5  ;;  %p631_p3 = por %p630_p1, %p629_p8 }
  0x47   : > { %p632_p4 = pnand %p631_p3, %p625_p10 }
  0x49   : > { %635 = shalt.err (!%p632_p4)
}
  0x4a   : > { %515 = dma.hbm_to_vmem [thread:$0]  (!%p825_p13), %s873_s19, 512, %s875_s26, %s180_s30, %s725_s29, %s725_s29, %s726_s3  }
  0x4b   : > { %205 = sbr.rel (%p866_p0) target bundleno = 344 (0x158), region = 28  ;;  %s909_s4 = sand.u32 (!%p866_p0), 1, %s706_s10  }
  0x4c   : > { %s480_s27 = sshll.u32 (!%p866_p0), %s909_s4, 4  ;;  %s208_s5 = scalar_lea.sflag (!%p866_p0), [#allocation4], %s909_s4 }
  0x4d   : > { %s211_s28 = scalar_lea.vmem (!%p866_p0), [#allocation3], %s480_s27  ;;  %p1002_p8 = scmp.ne.s32.totalorder (!%p866_p0), %s996_s21, 0 }
  0x52   : > { %689 = dma.done.wait (%p1002_p8), %s208_s5, 256  }
  0x53   : > { %691 = vsyncadd (%p1002_p8), %s208_s5, 4294967040  ;;  %s481_s25 = sshll.u32 %s909_s4, 5  ;;  %s217_s29 = scalar_lea.sflag [#allocation7], %s909_s4 }
  0x54   : > { %s220_s3 = scalar_lea.vmem [#allocation6], %s481_s25 }
  0x55   : > { %693 = dma.done.wait (%p1002_p8), %s217_s29, 512  }
  0x56   : > { %695 = vsyncadd (%p1002_p8), %s217_s29, 4294966784  ;;  %vm254_vm0 = vcmask 261120   ;;  %v728_v0 = vmov 0.0   ;;  %vm729_vm1 = vmmov 0   ;;  %v262_v1 = vld [vmem:[%s220_s3] sm:$0xff]  ;;  %v263_v2 = vld [vmem:[%s220_s3 + $0x8] sm:$0xff] }
  0x57   : > { %255 = vst.msk [vmem:[#allocation2] sm:$0xff] %vm254_vm0, %v728_v0  ;;  %256 = vst.msk [vmem:[#allocation2 + $0x8] sm:$0xff] %vm254_vm0, %v728_v0  ;;  %495 = vmatprep.subr.bf16.mxu0 %v728_v0  ;;  %499 = vmatprep.mubr.msk.bf16.mxu0 %vm729_vm1, %v728_v0  ;;  %v266_v3 = vpack.c.bf16 %v263_v2, %v262_v1  ;;  %v264_v4 = vld [vmem:[%s220_s3 + $0x10] sm:$0xff]  ;;  %v265_v5 = vld [vmem:[%s220_s3 + $0x18] sm:$0xff]  ;;  %s491_s21 = sshll.u32 %s714_s12, 8  ;;  %s245_s15 = scalar_lea.vmem [#allocation8], %s480_s27 }
  0x58   : > { %v267_v7 = vpack.c.bf16 %v265_v5, %v264_v4  ;;  %v259_v9 = vld [vmem:[%s211_s28] sm:$0xff]  ;;  %v260_v10 = vld [vmem:[%s211_s28 + $0x8] sm:$0xff]  ;;  %s347_s19 = sshll.u32 %s245_s15, 4  ;;  %s938_s8 = scalar_lea.hbm %s992_s2, %s491_s21  ;;  %s940_s19 = int_to_ptr.vmem [resolvable:$true] %s347_s19 }
  0x59   : > { %v273_v6 = vsel %vm254_vm0, %v266_v3, 0  ;;  %v261_v11 = vpack.c.bf16 %v260_v10, %v259_v9  ;;  %s331_s12 = scalar_lea.sflag [#allocation5], %s909_s4  ;;  %s636_s16 = scalar_lea.vmem %s940_s19, 256 }
  0x5a   : > { %496 = vmatpush3.bf16.xpose.msra.mxu0 %v273_v6  ;;  %v276_v8 = vsel %vm254_vm0, %v267_v7, 0  ;;  %p637_p13 = scmp.ne.s32.totalorder %s940_s19, %s636_s16  ;;  %p1003_p2 = scmp.ne.s32.totalorder %s997_s22, 0 }
  0x5b   : > { %497 = vmatprep.subr.bf16.mxu0 %v728_v0  ;;  %s730_s7 = smov [#allocation8]  }
  0x5c   : > { %p638_p0 = pnand %p637_p13, %p1003_p2  ;;  %s640_s18 = sshll.u32 %s730_s7, 4  ;;  %s641_s18 = int_to_ptr.vmem [resolvable:$false] %s640_s18 }
  0x5d   : > { %s642_s20 = scalar_lea.vmem %s641_s18, 512  ;;  %p643_p6 = scmp.lt.s32.totalorder %s940_s19, %s641_s18 }
  0x5e   : > { %v257_v12 = vld [vmem:[#allocation2] sm:$0xff]  ;;  %v258_v14 = vld [vmem:[#allocation2 + $0x8] sm:$0xff]  ;;  %p639_p12 = pneg %p638_p0  ;;  %p644_p7 = scmp.lt.s32.totalorder %s642_s20, %s636_s16 }
  0x60   : > { %p645_p9 = por %p644_p7, %p643_p6 }
  0x62   : > { %498 = vmatpush3.bf16.xpose.msra.mxu0 %v276_v8  ;;  %p646_p11 = pnand %p645_p9, %p639_p12 }
  0x69   : > { %500 = vmatmul.mubr.msk.bf16.vlgmr.msra.gmra.mrb[0].mxu0 %vm254_vm0, %v261_v11 }
 0x13c   : > { %v312_v13 = vpop.f32.mrb[0].mxu0 }
 0x13d   : > { %v319_v15 = vadd.f32 %v312_v13, %v257_v12  ;;  %v501_v16 = vpop.f32.mrb[1].mxu0 }
 0x13e   : > { %v315_v17 = vpop.f32.mrb[2].mxu0 }
 0x13f   : > { %321 = vst.msk [vmem:[#allocation2] sm:$0xff] %vm254_vm0, %v319_v15  ;;  %v320_v18 = vadd.f32 %v315_v17, %v258_v14  ;;  %v502_v19 = vpop.f32.mrb[3].mxu0 }
 0x141   : > { %322 = vst.msk [vmem:[#allocation2 + $0x8] sm:$0xff] %vm254_vm0, %v320_v18 }
 0x146   : > { %v326_v20 = vld [vmem:[#allocation2] sm:$0xff] }
 0x147   : > { %328 = vst.msk [vmem:[%s245_s15] sm:$0xff] %vm254_vm0, %v326_v20 }
 0x148   : > { %v327_v21 = vld [vmem:[#allocation2 + $0x8] sm:$0xff] }
 0x149   : > { %329 = vst.msk [vmem:[%s245_s15 + $0x8] sm:$0xff] %vm254_vm0, %v327_v21 }
 0x14a   : > { %649 = shalt.err (!%p646_p11)
}
 0x14b   : > { %s650_s6 = scalar_lea.hbm %s938_s8, 256  ;;  %s654_s28 = scalar_lea.hbm %s992_s2, 768 }
 0x14c   : > { %p651_p5 = scmp.ne.s32.totalorder %s938_s8, %s650_s6  ;;  %p655_p3 = scmp.lt.u32.totalorder %s938_s8, %s992_s2 }
 0x14d   : > { %p656_p4 = scmp.lt.u32.totalorder %s654_s28, %s650_s6  ;;  %p658_p13 = scmp.lt.u32.totalorder %s650_s6, %s938_s8 }
 0x14e   : > { %p652_p10 = pnand %p651_p5, %p1003_p2 }
 0x14f   : > { %p657_p8 = por %p656_p4, %p655_p3 }
 0x150   : > { %p653_p1 = pneg %p652_p10 }
 0x151   : > { %p659_p0 = por %p658_p13, %p657_p8 }
 0x153   : > { %p660_p12 = pnand %p659_p0, %p653_p1 }
 0x155   : > { %663 = shalt.err (!%p660_p12)
}
 0x156   : > { %s731_s3 = smov 128   ;;  %s732_s21 = smov 8  }
 0x157   : > { %507 = dma.vmem_to_hbm [thread:$0]  (%p1003_p2), %s940_s19, 256, %s938_s8, %s331_s12, %s731_s3, %s731_s3, %s732_s21  }
 0x158 PF: > { %p521_p6 = scmp.ge.s32.totalorder %s722_s14, 2  ;;  %s362_s15 = sand.u32 1, %s702_s9  }
 0x159   : > { %p1004_p7 = scmp.ne.s32.totalorder %s998_s24, 0  ;;  %s363_s26 = scalar_lea.sflag [#allocation5], %s362_s15 }
 0x15b   : > { %p517_p9 = pnand %p521_p6, %p1004_p7 }
 0x15d   : > { %697 = dma.done.wait (!%p517_p9), %s363_s26, 256  }
 0x15e   : > { %699 = vsyncadd (!%p517_p9), %s363_s26, 4294967040  ;;  %s21_s14 = sadd.s32 1, %s722_s14   ;;  %s1005_s9 = smov %s706_s10 }
 0x15f   : > { %p18_p11 = scmp.ge.s32.totalorder %s21_s14, 5   ;;  %s1006_s10 = smov %s710_s11 }
 0x160   : > { %s1007_s11 = smov %s804_s23  ;;  %s1008_s12 = smov %s718_s13 }
 0x161   : > { %s1009_s13 = smov %s1011_s17  ;;  %20 = sbr.rel (!%p18_p11) target bundleno = 8 (0x8), region = 94 }
 0x168   :  { %368 = vsyncpa [#allocation4], 1 }
 0x169   :  { %370 = vsyncpa [#allocation4 + $0x1], 1 }
 0x16a   :  { %371 = vsyncpa [#allocation7], 1 }
 0x16b   :  { %373 = vsyncpa [#allocation7 + $0x1], 1 }
 0x16c   :  { %374 = vsyncpa [#allocation5], 1 }
 0x16d   :  { %376 = vsyncpa [#allocation5 + $0x1], 1 }

</bundles_post_ra>
